<compile_context>
chip_gen: v5e
topology: v5e:2x2
jax: 0.10.0
libtpu: 0.0.40
codegen_flags: <defaults>
</compile_context>

<pallas_src>
import jax
import jax.numpy as jnp
from jax.experimental import pallas as pl
from jax.experimental.pallas import tpu as pltpu


# ----------------------------------------------------------------------------
# Fused Pallas kernel: encoder -> variance-adaptor heads -> pitch embedding
# -> length regulation (one-hot MXU gather) -> formant/excitation -> decoder.
# Single grid step; batch folded into rows.
# ----------------------------------------------------------------------------
def _fused_kernel(
    # scalar-prefetch refs (SMEM)
    tlen_ref, mlen_ref,
    # activations (VMEM, batch folded into rows)
    emb_ref, spk_ref, pit_ref, tok_ref,
    # resident weight slabs
    wA_ref, wB_ref, bias_ref,
    # outputs
    mel_ref, heads_ref,
):
    BT, H = emb_ref.shape
    BM = tok_ref.shape[0]
    B = tlen_ref.shape[0]
    T = BT // B
    M = BM // B
    n_mels = mel_ref.shape[1]
    H2 = 2 * H

    # ---- bias slab static lane offsets -----------------------------------
    o_enc_b = 0
    o_hb1 = H
    o_pemb_w = 3 * H
    o_pemb_b = 4 * H
    o_gen_b = 5 * H
    o_dec_b = 7 * H
    o_hb2 = 7 * H + n_mels

    enc_b = bias_ref[:, o_enc_b:o_enc_b + H]          # [1, H]
    hb1 = bias_ref[:, o_hb1:o_hb1 + H2]               # [1, 2H]
    pemb_w = bias_ref[:, o_pemb_w:o_pemb_w + H]       # [1, H]
    pemb_b = bias_ref[:, o_pemb_b:o_pemb_b + H]       # [1, H]
    gen_b = bias_ref[:, o_gen_b:o_gen_b + H2]         # [1, 2H] = form_b | exc_b
    dec_b = bias_ref[:, o_dec_b:o_dec_b + n_mels]     # [1, n_mels]
    hb2 = bias_ref[:, o_hb2:o_hb2 + 2]                # [1, 2]

    # ---- masks from scalar-prefetched lengths (static unroll over B) ------
    t_row = jax.lax.broadcasted_iota(jnp.int32, (BT, 1), 0)
    m_row = jax.lax.broadcasted_iota(jnp.int32, (BM, 1), 0)
    keep_t = jnp.zeros((BT, 1), jnp.float32)
    keep_m = jnp.zeros((BM, 1), jnp.float32)
    for b in range(B):  # B is small and static
        keep_t = keep_t + ((t_row >= b * T) &
                           (t_row < b * T + tlen_ref[b])).astype(jnp.float32)
        keep_m = keep_m + ((m_row >= b * M) &
                           (m_row < b * M + mlen_ref[b])).astype(jnp.float32)

    emb = emb_ref[...]                                # [BT, H]
    spk = spk_ref[...]                                # [BT, H]
    pit = pit_ref[...]                                # [BT, 1]

    # ---- encoder (redundant pre-mask dropped; keep_t applied once on x) ---
    enc = jnp.dot(emb, wA_ref[:, 0:H], preferred_element_type=jnp.float32)
    enc = jnp.maximum(enc + enc_b, 0.0)
    x = (enc + spk) * keep_t                          # h-stream [BT, H]

    # ---- fused duration/pitch heads: relu(x@hw1+hb1) @ hw2 + hb2 ----------
    hid = jnp.dot(x, wA_ref[:, H:3 * H], preferred_element_type=jnp.float32)
    hid = jnp.maximum(hid + hb1, 0.0)                 # [BT, 2H]
    heads = jnp.dot(hid, wB_ref[:, H2:H2 + 2],
                    preferred_element_type=jnp.float32) + hb2   # [BT, 2]
    heads_ref[...] = heads.astype(heads_ref.dtype)

    # ---- pitch embedding (VPU broadcast, no K=1 matmul) -------------------
    p_stream = (pit * pemb_w + pemb_b + spk) * keep_t            # [BT, H]
    s = jnp.concatenate([x, x + p_stream], axis=1)               # [BT, 2H]

    # ---- length regulation: ONE block-diagonal one-hot gather on the MXU --
    tok = tok_ref[...]                                # [BM, 1] global token idx
    onehot = (jax.lax.broadcasted_iota(jnp.int32, (BM, BT), 1) == tok
              ).astype(jnp.float32)                   # [BM, BT]
    g = jnp.dot(onehot, s, preferred_element_type=jnp.float32)
    # g = [h_up | h_up + p_up]                        # [BM, 2H]

    # ---- fused formant/excitation: one K=2H block-diagonal matmul ---------
    gen = jnp.dot(g, wB_ref[:, 0:H2], preferred_element_type=jnp.float32)
    gen = jnp.maximum(gen + gen_b, 0.0)               # [BM, 2H]
    dec_in = gen[:, :H] + gen[:, H:]                  # formant + excitation

    # ---- decoder + final mel mask -----------------------------------------
    mel = jnp.dot(dec_in, wA_ref[:, 3 * H:3 * H + n_mels],
                  preferred_element_type=jnp.float32) + dec_b
    mel_ref[...] = (mel * keep_m).astype(mel_ref.dtype)


# ----------------------------------------------------------------------------
# Plain-JAX glue
# ----------------------------------------------------------------------------
def get_mask(lengths, max_len):
    """True = padded position (matches torch `ids >= lengths`)."""
    ids = jnp.arange(max_len)
    return ids[None, :] >= lengths[:, None]


def duration_to_token_index(durations_int, max_mel_len, T):
    """cum-sum based frame->token index.  Stays in plain JAX (data-dependent)."""
    # TODO(synk): the per-frame token-index prefix-sum has no clean in-kernel
    # equivalent; it runs as cheap plain-JAX glue ahead of the kernel.
    cum = jnp.cumsum(durations_int, axis=1)                        # [B, T]
    mel_lens = cum[:, -1]                                          # [B]
    frame_idx = jnp.arange(max_mel_len)                            # [M]
    tok_idx = jnp.sum(frame_idx[None, :, None] >= cum[:, None, :], axis=-1)
    tok_idx = jnp.clip(tok_idx, 0, T - 1).astype(jnp.int32)        # [B, M]
    return tok_idx, mel_lens


# ----------------------------------------------------------------------------
# Parameters (deterministic synthetic init) + one-time packing
# ----------------------------------------------------------------------------
def init_params(key, vocab=40, hidden=32, speaker_num=4, n_mels=20):
    keys = jax.random.split(key, 16)
    s = 0.1
    return {
        "text_embedding": s * jax.random.normal(keys[0], (vocab, hidden), jnp.float32),
        "speaker_embedding": s * jax.random.normal(keys[1], (speaker_num, hidden), jnp.float32),
        "enc_w": s * jax.random.normal(keys[2], (hidden, hidden), jnp.float32),
        "enc_b": jnp.zeros((hidden,), jnp.float32),
        "dur_w1": s * jax.random.normal(keys[3], (hidden, hidden), jnp.float32),
        "dur_b1": jnp.zeros((hidden,), jnp.float32),
        "dur_w2": s * jax.random.normal(keys[4], (hidden, 1), jnp.float32),
        "dur_b2": jnp.zeros((1,), jnp.float32),
        "pit_w1": s * jax.random.normal(keys[5], (hidden, hidden), jnp.float32),
        "pit_b1": jnp.zeros((hidden,), jnp.float32),
        "pit_w2": s * jax.random.normal(keys[6], (hidden, 1), jnp.float32),
        "pit_b2": jnp.zeros((1,), jnp.float32),
        "pemb_w": s * jax.random.normal(keys[7], (1, hidden), jnp.float32),
        "pemb_b": jnp.zeros((hidden,), jnp.float32),
        "form_w": s * jax.random.normal(keys[8], (hidden, hidden), jnp.float32),
        "form_b": jnp.zeros((hidden,), jnp.float32),
        "exc_w": s * jax.random.normal(keys[9], (hidden, hidden), jnp.float32),
        "exc_b": jnp.zeros((hidden,), jnp.float32),
        "dec_w": s * jax.random.normal(keys[10], (hidden, n_mels), jnp.float32),
        "dec_b": jnp.zeros((n_mels,), jnp.float32),
    }


def prepare_params(params, p_control=1.0):
    """One-time packing of the per-layer weights into 3 resident slabs."""
    H = params["enc_w"].shape[0]
    n_mels = params["dec_w"].shape[1]
    H2 = 2 * H

    # wA (K = H): enc_w | (dur_w1 | pit_w1) | dec_w     -> [H, 3H + n_mels]
    wA = jnp.concatenate(
        [params["enc_w"], params["dur_w1"], params["pit_w1"], params["dec_w"]],
        axis=1).astype(jnp.float32)

    # wB (K = 2H): blockdiag(form_w, exc_w) | head_w2   -> [2H, 2H + 2]
    zero_hh = jnp.zeros((H, H), jnp.float32)
    gen_w = jnp.concatenate(
        [jnp.concatenate([params["form_w"], zero_hh], axis=1),
         jnp.concatenate([zero_hh, params["exc_w"]], axis=1)], axis=0)  # [2H,2H]
    hw2 = jnp.zeros((H2, 2), jnp.float32)
    hw2 = hw2.at[:H, 0].set(params["dur_w2"][:, 0])
    hw2 = hw2.at[H:, 1].set(params["pit_w2"][:, 0] * p_control)
    wB = jnp.concatenate([gen_w, hw2], axis=1).astype(jnp.float32)

    # bias slab [1, 7H + n_mels + 2]
    bias = jnp.concatenate([
        params["enc_b"],
        params["dur_b1"], params["pit_b1"],
        params["pemb_w"][0],
        params["pemb_b"],
        params["form_b"], params["exc_b"],
        params["dec_b"],
        jnp.array([params["dur_b2"][0], params["pit_b2"][0] * p_control],
                  jnp.float32),
    ])[None, :].astype(jnp.float32)

    return {
        "wA": wA, "wB": wB, "bias": bias,
        "text_embedding": params["text_embedding"],
        "speaker_embedding": params["speaker_embedding"],
        "H": H, "n_mels": n_mels,
    }


# ----------------------------------------------------------------------------
# FastPitchFormant forward
# ----------------------------------------------------------------------------
def fastpitchformant_forward(prep, text, text_length, speaker_id,
                             pitches, durations, max_mel_len, d_control=1.0):
    B, T = text.shape
    H = prep["H"]
    n_mels = prep["n_mels"]
    M = max_mel_len
    BT, BM = B * T, B * M

    text_length = text_length.astype(jnp.int32)
    text_mask = get_mask(text_length, T)                           # True = pad

    # Ground-truth durations drive length regulation (training-path forward).
    dur = jnp.maximum(jnp.round(durations.astype(jnp.float32) * d_control), 0.0)
    dur = dur.astype(jnp.int32) * (~text_mask).astype(jnp.int32)
    tok_idx, mel_lens = duration_to_token_index(dur, M, T)
    mel_lens = mel_lens.astype(jnp.int32)

    # Global (batch-folded) token indices for the block-diagonal one-hot.
    tok_global = (tok_idx +
                  (jnp.arange(B, dtype=jnp.int32) * T)[:, None]).reshape(BM, 1)

    # Embedding lookups (plain JAX gathers), batch folded into rows.
    emb = prep["text_embedding"][text].astype(jnp.float32).reshape(BT, H)
    spk = prep["speaker_embedding"][speaker_id].astype(jnp.float32)   # [B, H]
    spk_rows = jnp.repeat(spk, T, axis=0)                             # [BT, H]
    pit = pitches.astype(jnp.float32).reshape(BT, 1)

    full2d = lambda i, tl, ml: (0, 0)       # single-step grid, whole blocks

    mel_flat, heads_flat = pl.pallas_call(
        _fused_kernel,
        out_shape=(
            jax.ShapeDtypeStruct((BM, n_mels), jnp.float32),
            jax.ShapeDtypeStruct((BT, 2), jnp.float32),
        ),
        grid_spec=pltpu.PrefetchScalarGridSpec(
            num_scalar_prefetch=2,
            grid=(1,),
            in_specs=[
                pl.BlockSpec((BT, H), full2d),                     # emb
                pl.BlockSpec((BT, H), full2d),                     # spk_rows
                pl.BlockSpec((BT, 1), full2d),                     # pitches
                pl.BlockSpec((BM, 1), full2d),                     # tok_global
                pl.BlockSpec((H, 3 * H + n_mels), full2d),         # wA slab
                pl.BlockSpec((2 * H, 2 * H + 2), full2d),          # wB slab
                pl.BlockSpec((1, 7 * H + n_mels + 2), full2d),     # bias slab
            ],
            out_specs=[
                pl.BlockSpec((BM, n_mels), full2d),                # mel
                pl.BlockSpec((BT, 2), full2d),                     # heads
            ],
        ),
        compiler_params=pltpu.CompilerParams(
            dimension_semantics=("arbitrary",)),
    )(
        text_length, mel_lens,                                     # scalar prefetch
        emb, spk_rows, pit, tok_global,
        prep["wA"], prep["wB"], prep["bias"],
    )

    mel = mel_flat.reshape(B, M, n_mels)
    heads = heads_flat.reshape(B, T, 2)
    log_durations = heads[:, :, 0]
    pred_pitches = heads[:, :, 1]
    mel_masks = get_mask(mel_lens, M)
    return mel, pred_pitches, log_durations, mel_lens, mel_masks


# ----------------------------------------------------------------------------
if __name__ == "__main__":
    B, T, H, VOCAB, N_SPK, N_MELS = 2, 8, 32, 40, 4, 20
    MAX_MEL_LEN = 24

    key = jax.random.PRNGKey(0)
    k_par, k_txt, k_spk, k_pit, k_dur = jax.random.split(key, 5)

    params = init_params(k_par, vocab=VOCAB, hidden=H,
                         speaker_num=N_SPK, n_mels=N_MELS)
    prep = prepare_params(params, p_control=1.0)     # one-time weight packing

    text = jax.random.randint(k_txt, (B, T), 0, VOCAB, dtype=jnp.int32)
    text_length = jnp.array([8, 6], dtype=jnp.int32)
    speaker_id = jax.random.randint(k_spk, (B,), 0, N_SPK, dtype=jnp.int32)
    pitches = jax.random.normal(k_pit, (B, T), jnp.float32)
    durations = jax.random.randint(k_dur, (B, T), 1, 4, dtype=jnp.int32)

    mel, pred_pitches, log_durations, mel_lens, mel_masks = fastpitchformant_forward(
        prep, text, text_length, speaker_id, pitches, durations, MAX_MEL_LEN,
        d_control=1.0)

    jax.block_until_ready(mel)
    jax.block_until_ready(pred_pitches)
    jax.block_until_ready(log_durations)

    assert mel.shape == (B, MAX_MEL_LEN, N_MELS)
    assert pred_pitches.shape == (B, T)
    assert log_durations.shape == (B, T)
    assert bool(jnp.all(jnp.isfinite(mel)))
    print("KERNEL_OK")
</pallas_src>

<mosaic_0001>
module attributes {stable_mosaic.version = 11 : i64} {
  func.func @_fused_kernel(%arg0: i32, %arg1: memref<2xi32, #tpu.memory_space<smem>>, %arg2: memref<2xi32, #tpu.memory_space<smem>>, %arg3: memref<16x32xf32, #tpu.memory_space<vmem>>, %arg4: memref<16x32xf32, #tpu.memory_space<vmem>>, %arg5: memref<16x1xf32, #tpu.memory_space<vmem>>, %arg6: memref<48x1xi32, #tpu.memory_space<vmem>>, %arg7: memref<32x116xf32, #tpu.memory_space<vmem>>, %arg8: memref<64x66xf32, #tpu.memory_space<vmem>>, %arg9: memref<1x246xf32, #tpu.memory_space<vmem>>, %arg10: memref<48x20xf32, #tpu.memory_space<vmem>>, %arg11: memref<16x2xf32, #tpu.memory_space<vmem>>) attributes {dimension_semantics = [#tpu.dimension_semantics<arbitrary>], iteration_bounds = array<i64: 1>, scalar_prefetch = 2 : i64, scratch_operands = 0 : i64, tpu.core_type = #tpu.core_type<tc>, window_params = [{pipeline_mode = #tpu.pipeline_mode<synchronous>, transform_indices = @transform_0, window_bounds = array<i64: 16, 32>}, {pipeline_mode = #tpu.pipeline_mode<synchronous>, transform_indices = @transform_1, window_bounds = array<i64: 16, 32>}, {pipeline_mode = #tpu.pipeline_mode<synchronous>, transform_indices = @transform_2, window_bounds = array<i64: 16, 1>}, {pipeline_mode = #tpu.pipeline_mode<synchronous>, transform_indices = @transform_3, window_bounds = array<i64: 48, 1>}, {pipeline_mode = #tpu.pipeline_mode<synchronous>, transform_indices = @transform_4, window_bounds = array<i64: 32, 116>}, {pipeline_mode = #tpu.pipeline_mode<synchronous>, transform_indices = @transform_5, window_bounds = array<i64: 64, 66>}, {pipeline_mode = #tpu.pipeline_mode<synchronous>, transform_indices = @transform_6, window_bounds = array<i64: 1, 246>}, {pipeline_mode = #tpu.pipeline_mode<synchronous>, transform_indices = @transform_7, window_bounds = array<i64: 48, 20>}, {pipeline_mode = #tpu.pipeline_mode<synchronous>, transform_indices = @transform_8, window_bounds = array<i64: 16, 2>}]} {
    %c0 = arith.constant 0 : index
    %c0_0 = arith.constant 0 : index
    %0 = vector.load %arg9[%c0, %c0_0] : memref<1x246xf32, #tpu.memory_space<vmem>>, vector<1x32xf32>
    %c0_1 = arith.constant 0 : index
    %c32 = arith.constant 32 : index
    %1 = vector.load %arg9[%c0_1, %c32] : memref<1x246xf32, #tpu.memory_space<vmem>>, vector<1x64xf32>
    %c0_2 = arith.constant 0 : index
    %c96 = arith.constant 96 : index
    %2 = vector.load %arg9[%c0_2, %c96] : memref<1x246xf32, #tpu.memory_space<vmem>>, vector<1x32xf32>
    %c0_3 = arith.constant 0 : index
    %c128 = arith.constant 128 : index
    %3 = vector.load %arg9[%c0_3, %c128] : memref<1x246xf32, #tpu.memory_space<vmem>>, vector<1x32xf32>
    %c0_4 = arith.constant 0 : index
    %c160 = arith.constant 160 : index
    %4 = vector.load %arg9[%c0_4, %c160] : memref<1x246xf32, #tpu.memory_space<vmem>>, vector<1x64xf32>
    %c0_5 = arith.constant 0 : index
    %c224 = arith.constant 224 : index
    %5 = vector.load %arg9[%c0_5, %c224] : memref<1x246xf32, #tpu.memory_space<vmem>>, vector<1x20xf32>
    %c0_6 = arith.constant 0 : index
    %c244 = arith.constant 244 : index
    %6 = vector.load %arg9[%c0_6, %c244] : memref<1x246xf32, #tpu.memory_space<vmem>>, vector<1x2xf32>
    %7 = tpu.iota {dimensions = array<i32: 0>} : vector<16x1xi32>
    %8 = tpu.iota {dimensions = array<i32: 0>} : vector<48x1xi32>
    %cst = arith.constant 0.000000e+00 : f32
    %9 = vector.broadcast %cst : f32 to vector<16x1xf32>
    %cst_7 = arith.constant 0.000000e+00 : f32
    %10 = vector.broadcast %cst_7 : f32 to vector<48x1xf32>
    %c0_i32 = arith.constant 0 : i32
    %11 = vector.broadcast %c0_i32 : i32 to vector<16x1xi32>
    %12 = arith.cmpi sge, %7, %11 : vector<16x1xi32>
    %c0_8 = arith.constant 0 : index
    %13 = memref.load %arg1[%c0_8] : memref<2xi32, #tpu.memory_space<smem>>
    %c0_i32_9 = arith.constant 0 : i32
    %14 = arith.addi %c0_i32_9, %13 : i32
    %15 = vector.broadcast %14 : i32 to vector<16x1xi32>
    %16 = arith.cmpi slt, %7, %15 : vector<16x1xi32>
    %17 = arith.andi %12, %16 : vector<16x1xi1>
    %18 = arith.extui %17 : vector<16x1xi1> to vector<16x1xi32>
    %19 = arith.sitofp %18 : vector<16x1xi32> to vector<16x1xf32>
    %20 = arith.addf %9, %19 : vector<16x1xf32>
    %c0_i32_10 = arith.constant 0 : i32
    %21 = vector.broadcast %c0_i32_10 : i32 to vector<48x1xi32>
    %22 = arith.cmpi sge, %8, %21 : vector<48x1xi32>
    %c0_11 = arith.constant 0 : index
    %23 = memref.load %arg2[%c0_11] : memref<2xi32, #tpu.memory_space<smem>>
    %c0_i32_12 = arith.constant 0 : i32
    %24 = arith.addi %c0_i32_12, %23 : i32
    %25 = vector.broadcast %24 : i32 to vector<48x1xi32>
    %26 = arith.cmpi slt, %8, %25 : vector<48x1xi32>
    %27 = arith.andi %22, %26 : vector<48x1xi1>
    %28 = arith.extui %27 : vector<48x1xi1> to vector<48x1xi32>
    %29 = arith.sitofp %28 : vector<48x1xi32> to vector<48x1xf32>
    %30 = arith.addf %10, %29 : vector<48x1xf32>
    %c8_i32 = arith.constant 8 : i32
    %31 = vector.broadcast %c8_i32 : i32 to vector<16x1xi32>
    %32 = arith.cmpi sge, %7, %31 : vector<16x1xi32>
    %c1 = arith.constant 1 : index
    %33 = memref.load %arg1[%c1] : memref<2xi32, #tpu.memory_space<smem>>
    %c8_i32_13 = arith.constant 8 : i32
    %34 = arith.addi %c8_i32_13, %33 : i32
    %35 = vector.broadcast %34 : i32 to vector<16x1xi32>
    %36 = arith.cmpi slt, %7, %35 : vector<16x1xi32>
    %37 = arith.andi %32, %36 : vector<16x1xi1>
    %38 = arith.extui %37 : vector<16x1xi1> to vector<16x1xi32>
    %39 = arith.sitofp %38 : vector<16x1xi32> to vector<16x1xf32>
    %40 = arith.addf %20, %39 : vector<16x1xf32>
    %c24_i32 = arith.constant 24 : i32
    %41 = vector.broadcast %c24_i32 : i32 to vector<48x1xi32>
    %42 = arith.cmpi sge, %8, %41 : vector<48x1xi32>
    %c1_14 = arith.constant 1 : index
    %43 = memref.load %arg2[%c1_14] : memref<2xi32, #tpu.memory_space<smem>>
    %c24_i32_15 = arith.constant 24 : i32
    %44 = arith.addi %c24_i32_15, %43 : i32
    %45 = vector.broadcast %44 : i32 to vector<48x1xi32>
    %46 = arith.cmpi slt, %8, %45 : vector<48x1xi32>
    %47 = arith.andi %42, %46 : vector<48x1xi1>
    %48 = arith.extui %47 : vector<48x1xi1> to vector<48x1xi32>
    %49 = arith.sitofp %48 : vector<48x1xi32> to vector<48x1xf32>
    %50 = arith.addf %30, %49 : vector<48x1xf32>
    %c0_16 = arith.constant 0 : index
    %c0_17 = arith.constant 0 : index
    %51 = vector.load %arg3[%c0_16, %c0_17] : memref<16x32xf32, #tpu.memory_space<vmem>>, vector<16x32xf32>
    %c0_18 = arith.constant 0 : index
    %c0_19 = arith.constant 0 : index
    %52 = vector.load %arg4[%c0_18, %c0_19] : memref<16x32xf32, #tpu.memory_space<vmem>>, vector<16x32xf32>
    %c0_20 = arith.constant 0 : index
    %c0_21 = arith.constant 0 : index
    %53 = vector.load %arg5[%c0_20, %c0_21] : memref<16x1xf32, #tpu.memory_space<vmem>>, vector<16x1xf32>
    %c0_22 = arith.constant 0 : index
    %c0_23 = arith.constant 0 : index
    %54 = vector.load %arg7[%c0_22, %c0_23] : memref<32x116xf32, #tpu.memory_space<vmem>>, vector<32x32xf32>
    %cst_24 = arith.constant dense<0.000000e+00> : vector<16x32xf32>
    %55 = tpu.matmul %51, %54, %cst_24 {dimension_numbers = #tpu.dot_dimension_numbers<[1], [0], [0], [1], [0, 0, 1, 1], [], []>} : vector<16x32xf32>, vector<32x32xf32>, vector<16x32xf32> -> vector<16x32xf32>
    %56 = vector.broadcast %0 : vector<1x32xf32> to vector<16x32xf32>
    %57 = arith.addf %55, %56 : vector<16x32xf32>
    %cst_25 = arith.constant 0.000000e+00 : f32
    %58 = vector.broadcast %cst_25 : f32 to vector<16x32xf32>
    %59 = arith.maximumf %57, %58 : vector<16x32xf32>
    %60 = arith.addf %59, %52 : vector<16x32xf32>
    %61 = vector.broadcast %40 : vector<16x1xf32> to vector<16x32xf32>
    %62 = arith.mulf %60, %61 : vector<16x32xf32>
    %c0_26 = arith.constant 0 : index
    %c32_27 = arith.constant 32 : index
    %63 = vector.load %arg7[%c0_26, %c32_27] : memref<32x116xf32, #tpu.memory_space<vmem>>, vector<32x64xf32>
    %cst_28 = arith.constant dense<0.000000e+00> : vector<16x64xf32>
    %64 = tpu.matmul %62, %63, %cst_28 {dimension_numbers = #tpu.dot_dimension_numbers<[1], [0], [0], [1], [0, 0, 1, 1], [], []>} : vector<16x32xf32>, vector<32x64xf32>, vector<16x64xf32> -> vector<16x64xf32>
    %65 = vector.broadcast %1 : vector<1x64xf32> to vector<16x64xf32>
    %66 = arith.addf %64, %65 : vector<16x64xf32>
    %cst_29 = arith.constant 0.000000e+00 : f32
    %67 = vector.broadcast %cst_29 : f32 to vector<16x64xf32>
    %68 = arith.maximumf %66, %67 : vector<16x64xf32>
    %c0_30 = arith.constant 0 : index
    %c64 = arith.constant 64 : index
    %69 = vector.load %arg8[%c0_30, %c64] : memref<64x66xf32, #tpu.memory_space<vmem>>, vector<64x2xf32>
    %cst_31 = arith.constant dense<0.000000e+00> : vector<16x2xf32>
    %70 = tpu.matmul %68, %69, %cst_31 {dimension_numbers = #tpu.dot_dimension_numbers<[1], [0], [0], [1], [0, 0, 1, 1], [], []>} : vector<16x64xf32>, vector<64x2xf32>, vector<16x2xf32> -> vector<16x2xf32>
    %71 = vector.broadcast %6 : vector<1x2xf32> to vector<16x2xf32>
    %72 = arith.addf %70, %71 : vector<16x2xf32>
    %c0_32 = arith.constant 0 : index
    %c0_33 = arith.constant 0 : index
    %73 = vector.load %arg11[%c0_32, %c0_33] : memref<16x2xf32, #tpu.memory_space<vmem>>, vector<16x2xf32>
    tpu.vector_store %arg11[%c0_32, %c0_33], %72 {strides = array<i32>} : memref<16x2xf32, #tpu.memory_space<vmem>>, vector<16x2xf32>,
    %74 = vector.broadcast %53 : vector<16x1xf32> to vector<16x32xf32>
    %75 = vector.broadcast %2 : vector<1x32xf32> to vector<16x32xf32>
    %76 = arith.mulf %74, %75 : vector<16x32xf32>
    %77 = vector.broadcast %3 : vector<1x32xf32> to vector<16x32xf32>
    %78 = arith.addf %76, %77 : vector<16x32xf32>
    %79 = arith.addf %78, %52 : vector<16x32xf32>
    %80 = vector.broadcast %40 : vector<16x1xf32> to vector<16x32xf32>
    %81 = arith.mulf %79, %80 : vector<16x32xf32>
    %82 = arith.addf %62, %81 : vector<16x32xf32>
    %83 = tpu.concatenate %62, %82 in 1 : vector<16x32xf32>, vector<16x32xf32> -> vector<16x64xf32>
    %c0_34 = arith.constant 0 : index
    %c0_35 = arith.constant 0 : index
    %84 = vector.load %arg6[%c0_34, %c0_35] : memref<48x1xi32, #tpu.memory_space<vmem>>, vector<48x1xi32>
    %85 = tpu.iota {dimensions = array<i32: 1>} : vector<48x16xi32>
    %86 = vector.broadcast %84 : vector<48x1xi32> to vector<48x16xi32>
    %87 = arith.cmpi eq, %85, %86 : vector<48x16xi32>
    %88 = arith.extui %87 : vector<48x16xi1> to vector<48x16xi32>
    %89 = arith.sitofp %88 : vector<48x16xi32> to vector<48x16xf32>
    %cst_36 = arith.constant dense<0.000000e+00> : vector<48x64xf32>
    %90 = tpu.matmul %89, %83, %cst_36 {dimension_numbers = #tpu.dot_dimension_numbers<[1], [0], [0], [1], [0, 0, 1, 1], [], []>} : vector<48x16xf32>, vector<16x64xf32>, vector<48x64xf32> -> vector<48x64xf32>
    %c0_37 = arith.constant 0 : index
    %c0_38 = arith.constant 0 : index
    %91 = vector.load %arg8[%c0_37, %c0_38] : memref<64x66xf32, #tpu.memory_space<vmem>>, vector<64x64xf32>
    %cst_39 = arith.constant dense<0.000000e+00> : vector<48x64xf32>
    %92 = tpu.matmul %90, %91, %cst_39 {dimension_numbers = #tpu.dot_dimension_numbers<[1], [0], [0], [1], [0, 0, 1, 1], [], []>} : vector<48x64xf32>, vector<64x64xf32>, vector<48x64xf32> -> vector<48x64xf32>
    %93 = vector.broadcast %4 : vector<1x64xf32> to vector<48x64xf32>
    %94 = arith.addf %92, %93 : vector<48x64xf32>
    %cst_40 = arith.constant 0.000000e+00 : f32
    %95 = vector.broadcast %cst_40 : f32 to vector<48x64xf32>
    %96 = arith.maximumf %94, %95 : vector<48x64xf32>
    %97 = vector.extract_strided_slice %96 {offsets = [0, 0], sizes = [48, 32], strides = [1, 1]} : vector<48x64xf32> to vector<48x32xf32>
    %98 = vector.extract_strided_slice %96 {offsets = [0, 32], sizes = [48, 32], strides = [1, 1]} : vector<48x64xf32> to vector<48x32xf32>
    %99 = arith.addf %97, %98 : vector<48x32xf32>
    %c0_41 = arith.constant 0 : index
    %c96_42 = arith.constant 96 : index
    %100 = vector.load %arg7[%c0_41, %c96_42] : memref<32x116xf32, #tpu.memory_space<vmem>>, vector<32x20xf32>
    %cst_43 = arith.constant dense<0.000000e+00> : vector<48x20xf32>
    %101 = tpu.matmul %99, %100, %cst_43 {dimension_numbers = #tpu.dot_dimension_numbers<[1], [0], [0], [1], [0, 0, 1, 1], [], []>} : vector<48x32xf32>, vector<32x20xf32>, vector<48x20xf32> -> vector<48x20xf32>
    %102 = vector.broadcast %5 : vector<1x20xf32> to vector<48x20xf32>
    %103 = arith.addf %101, %102 : vector<48x20xf32>
    %104 = vector.broadcast %50 : vector<48x1xf32> to vector<48x20xf32>
    %105 = arith.mulf %103, %104 : vector<48x20xf32>
    %c0_44 = arith.constant 0 : index
    %c0_45 = arith.constant 0 : index
    %106 = vector.load %arg10[%c0_44, %c0_45] : memref<48x20xf32, #tpu.memory_space<vmem>>, vector<48x20xf32>
    tpu.vector_store %arg10[%c0_44, %c0_45], %105 {strides = array<i32>} : memref<48x20xf32, #tpu.memory_space<vmem>>, vector<48x20xf32>,
    return
  }
  func.func @transform_0(%arg0: i32, %arg1: memref<2xi32, #tpu.memory_space<smem>>, %arg2: memref<2xi32, #tpu.memory_space<smem>>) -> (i32, i32) {
    %c0_i32 = arith.constant 0 : i32
    %c0_i32_0 = arith.constant 0 : i32
    %c0_i32_1 = arith.constant 0 : i32
    return %c0_i32, %c0_i32_0 : i32, i32
  }
  func.func @transform_1(%arg0: i32, %arg1: memref<2xi32, #tpu.memory_space<smem>>, %arg2: memref<2xi32, #tpu.memory_space<smem>>) -> (i32, i32) {
    %c0_i32 = arith.constant 0 : i32
    %c0_i32_0 = arith.constant 0 : i32
    %c0_i32_1 = arith.constant 0 : i32
    return %c0_i32, %c0_i32_0 : i32, i32
  }
  func.func @transform_2(%arg0: i32, %arg1: memref<2xi32, #tpu.memory_space<smem>>, %arg2: memref<2xi32, #tpu.memory_space<smem>>) -> (i32, i32) {
    %c0_i32 = arith.constant 0 : i32
    %c0_i32_0 = arith.constant 0 : i32
    %c0_i32_1 = arith.constant 0 : i32
    return %c0_i32, %c0_i32_0 : i32, i32
  }
  func.func @transform_3(%arg0: i32, %arg1: memref<2xi32, #tpu.memory_space<smem>>, %arg2: memref<2xi32, #tpu.memory_space<smem>>) -> (i32, i32) {
    %c0_i32 = arith.constant 0 : i32
    %c0_i32_0 = arith.constant 0 : i32
    %c0_i32_1 = arith.constant 0 : i32
    return %c0_i32, %c0_i32_0 : i32, i32
  }
  func.func @transform_4(%arg0: i32, %arg1: memref<2xi32, #tpu.memory_space<smem>>, %arg2: memref<2xi32, #tpu.memory_space<smem>>) -> (i32, i32) {
    %c0_i32 = arith.constant 0 : i32
    %c0_i32_0 = arith.constant 0 : i32
    %c0_i32_1 = arith.constant 0 : i32
    return %c0_i32, %c0_i32_0 : i32, i32
  }
  func.func @transform_5(%arg0: i32, %arg1: memref<2xi32, #tpu.memory_space<smem>>, %arg2: memref<2xi32, #tpu.memory_space<smem>>) -> (i32, i32) {
    %c0_i32 = arith.constant 0 : i32
    %c0_i32_0 = arith.constant 0 : i32
    %c0_i32_1 = arith.constant 0 : i32
    return %c0_i32, %c0_i32_0 : i32, i32
  }
  func.func @transform_6(%arg0: i32, %arg1: memref<2xi32, #tpu.memory_space<smem>>, %arg2: memref<2xi32, #tpu.memory_space<smem>>) -> (i32, i32) {
    %c0_i32 = arith.constant 0 : i32
    %c0_i32_0 = arith.constant 0 : i32
    %c0_i32_1 = arith.constant 0 : i32
    return %c0_i32, %c0_i32_0 : i32, i32
  }
  func.func @transform_7(%arg0: i32, %arg1: memref<2xi32, #tpu.memory_space<smem>>, %arg2: memref<2xi32, #tpu.memory_space<smem>>) -> (i32, i32) {
    %c0_i32 = arith.constant 0 : i32
    %c0_i32_0 = arith.constant 0 : i32
    %c0_i32_1 = arith.constant 0 : i32
    return %c0_i32, %c0_i32_0 : i32, i32
  }
  func.func @transform_8(%arg0: i32, %arg1: memref<2xi32, #tpu.memory_space<smem>>, %arg2: memref<2xi32, #tpu.memory_space<smem>>) -> (i32, i32) {
    %c0_i32 = arith.constant 0 : i32
    %c0_i32_0 = arith.constant 0 : i32
    %c0_i32_1 = arith.constant 0 : i32
    return %c0_i32, %c0_i32_0 : i32, i32
  }
}

</mosaic_0001>

<bundles_post_ra>
// kernel: tpu_custom_call.1
= control target key start
LH: loop header
LB: loop body
LE: loop exit
PB: predicated region body
PF: predicated region fallthrough
CT: control target
= control target key end

     0   :  { %s932_s19 = smov [#allocation3]   ;;  %s933_s20 = smov [#allocation4]   ;;  %s1218_s0 = inlined_call_operand.vmem [shape: s32[2], index: 0, kind: input, shape index: {}]   ;;  %s1219_s2 = inlined_call_operand.hbm [shape: f32[16,32], index: 2, kind: input, shape index: {}]   ;;  %s1220_s3 = inlined_call_operand.hbm [shape: f32[16,32], index: 3, kind: input, shape index: {}]   ;;  %s1221_s4 = inlined_call_operand.vmem [shape: f32[16,1], index: 4, kind: input, shape index: {}]   ;;  %s1222_s5 = inlined_call_operand.vmem [shape: s32[48,1], index: 5, kind: input, shape index: {}]   ;;  %s1223_s6 = inlined_call_operand.hbm [shape: f32[32,116], index: 6, kind: input, shape index: {}]   ;;  %s1224_s7 = inlined_call_operand.vmem [shape: f32[64,66], index: 7, kind: input, shape index: {}]   ;;  %s1225_s8 = inlined_call_operand.vmem [shape: f32[1,246], index: 8, kind: input, shape index: {}]   ;;  %s1226_s9 = inlined_call_operand.vmem [shape: f32[48,20], index: 9, kind: output, shape index: {0}]   ;;  %s1227_s10 = inlined_call_operand.vmem [shape: f32[16,2], index: 10, kind: output, shape index: {1}]   ;;  %s1228_s1 = inlined_call_operand.hbm [shape: s32[2], index: 1, kind: input, shape index: {}]  }
   0x1   :  { %s17_s15 = sshll.u32 %s1218_s0, 4  ;;  %s22_s18 = sshll.u32 %s1228_s1, 4  ;;  %s18_s15 = int_to_ptr.vmem [resolvable:$true] %s17_s15  ;;  %s23_s18 = int_to_ptr.hbm [resolvable:$true] %s22_s18 }
   0x2   :  { %20 = dma.vmem_to_smem %s18_s15, 16, %s932_s19, [#allocation2] }
   0x3   :  { %25 = dma.hbm_to_smem %s23_s18, 16, %s933_s20, [#allocation2] }
   0x4   :  { %926 = dma.done.wait [#allocation2], 32 }
   0x5   :  { %927 = vsyncadd [#allocation2], 4294967264 }
   0x6   :  { %28 = sfence }
   0x7   :  { %29 = vsyncpa [#allocation6], 0 }
   0x8   :  { %30 = vsyncpa [#allocation8], 0  ;;  %s48_s23 = sshll.u32 %s1220_s3, 4  ;;  %s934_s0 = smov [#allocation7]   ;;  %s49_s23 = int_to_ptr.hbm [resolvable:$true] %s48_s23 }
   0x9   :  { %s50_s24 = sshll.u32 %s934_s0, 4  ;;  %s35_s26 = sshll.u32 %s1219_s2, 4  ;;  %s51_s24 = int_to_ptr.vmem [resolvable:$true] %s50_s24  ;;  %s36_s26 = int_to_ptr.hbm [resolvable:$true] %s35_s26 }
   0xa   :  { %s935_s27 = smov 128   ;;  %s936_s28 = smov 8  }
   0xb   :  { %56 = dma.hbm_to_vmem [thread:$0]  %s49_s23, 256, %s51_s24, [#allocation8], %s935_s27, %s935_s27, %s936_s28  }
   0xc   :  { %s937_s29 = smov [#allocation5]   ;;  %s65_s13 = sshll.u32 %s1223_s6, 4  ;;  %s66_s13 = int_to_ptr.hbm [resolvable:$true] %s65_s13 }
   0xd   :  { %s37_s30 = sshll.u32 %s937_s29, 4  ;;  %s938_s3 = smov [#allocation9]   ;;  %s38_s30 = int_to_ptr.vmem [resolvable:$true] %s37_s30 }
   0xe   :  { %43 = dma.hbm_to_vmem [thread:$0]  %s36_s26, 256, %s38_s30, [#allocation6], %s935_s27, %s935_s27, %s936_s28  }
   0xf   :  { %s67_s14 = sshll.u32 %s938_s3, 4  ;;  %s68_s14 = int_to_ptr.vmem [resolvable:$true] %s67_s14 }
  0x10   :  { %73 = dma.hbm_to_vmem [thread:$0]  %s66_s13, 512, %s68_s14, [#allocation8], %s935_s27, %s935_s27, %s936_s28  }
  0x11   :  { %928 = dma.done.wait [#allocation6], 256  }
  0x12   :  { %929 = vsyncadd [#allocation6], 4294967040 }
  0x13   :  { %930 = dma.done.wait [#allocation8], 768  }
  0x14   :  { %931 = vsyncadd [#allocation8], 4294966528  ;;  %v939_v0 = vmov 0   ;;  %v208_v1 = vld [vmem:[%s1221_s4 + $0x8] sm:$0xff]  ;;  %v1021_v2 = vld [vmem:[%s1225_s8 + $0x1] ss:$0 sm:$0xff]  ;;  %v92_v14 = vlaneseq }
  0x15   :  { %780 = vset.pattern.permute.xlu0 %v939_v0  ;;  %786 = vset.pattern.permute.xlu2 %v939_v0  ;;  %v1023_v3 = vld [vmem:[#allocation7] sm:$0xff]  ;;  %s940_s17 = smov 96   ;;  %v212_v4 = vld [vmem:[#allocation9 + $0x18] sm:$0xff]  ;;  %v210_v7 = vld [vmem:[#allocation9 + $0x8] sm:$0xff]  ;;  %vm216_vm0 = vcmask 261120   ;;  %s731_s20 = sld [smem:[#allocation3 + $0x1]] }
  0x16   :  { %787 = vset.pattern.permute.xlu1 %v939_v0  ;;  %387 = vperm.xlu0 %780, %v208_v1   ;;  %v211_v5 = vld [vmem:[#allocation9 + $0x10] sm:$0xff]  ;;  %v209_v8 = vld [vmem:[#allocation9] sm:$0xff]  ;;  %v1034_v11 = vld [vmem:[#allocation7 + $0x8] sm:$0xff]  ;;  %s101_s21 = sld [smem:[#allocation3]]  ;;  %v1041_v15 = vshrl.u32 %v92_v14, 7  ;;  %v941_v23 = vmov 0.0  }
  0x17   :  { %392 = vrot.lane.b32.xlu1 %v1021_v2, %s940_s17  ;;  %399 = vrot.lane.b32.xlu2 %v1023_v3, %s940_s17  ;;  %v1029_v6 = vpack.i.bf16 %v211_v5, %v212_v4  ;;  %v793_v9 = vpack.i.bf16 %v209_v8, %v210_v7  ;;  %v207_v10 = vld [vmem:[%s1221_s4] sm:$0xff]  ;;  %v204_v13 = vld [vmem:[#allocation5 + $0x8] sm:$0xff]  ;;  %v432_v40 = vld [vmem:[%s1222_s5 + $0x18] sm:$0xff]  ;;  %vm473_vm5 = vcmask 130048   ;;  %vm347_vm11 = vcmask 523264   ;;  %s944_s1 = smov 12  }
  0x18   :  { %235 = vmatpush.msra.mxu2 %v212_v4  ;;  %v203_v12 = vld [vmem:[#allocation5] sm:$0xff]  ;;  %v1044_v16 = vadd.s32 8, %v1041_v15  ;;  %v430_v39 = vld [vmem:[%s1222_s5 + $0x8] sm:$0xff]  ;;  %v431_v63 = vld [vmem:[%s1222_s5 + $0x10] sm:$0xff]  ;;  %vm706_vm13 = vcmask 162816  }
  0x19   :  { %v1049_v20 = vld [vmem:[%s1225_s8] ss:$0 sm:$0xff]  ;;  %s942_s8 = smov 32   ;;  %v434_v1 = vld [vmem:[%s1222_s5 + $0x28] sm:$0xff] }
  0x1a   :  { %236 = vmatpush.msra.mxu2 %v211_v5  ;;  %v429_v38 = vld [vmem:[%s1222_s5] sm:$0xff] }
  0x1b   :  { %s152_s4 = sadd.s32 8, %s731_s20  ;;  %v433_v41 = vld [vmem:[%s1222_s5 + $0x20] sm:$0xff] }
  0x1c   :  { %237 = vmatpush.msra.mxu2 %v210_v7  ;;  %v102_v17 = vstv %s101_s21  ;;  %v153_v18 = vstv %s152_s4  ;;  %v436_v7 = vand.u32 127, %v92_v14 }
  0x1d   :  { %vm104_vm1 = vcmp.lt.s32.totalorder %v1044_v16, %v102_v17  ;;  %vm155_vm2 = vcmp.lt.s32.totalorder %v1044_v16, %v153_v18  ;;  %vm103_vm3 = vcmp.lt.s32.totalorder %v1041_v15, %v102_v17  ;;  %v534_v17 = vld [vmem:[%s1224_s7 + $0x38] sm:$0xff]  ;;  %v533_v18 = vld [vmem:[%s1224_s7 + $0x30] sm:$0xff] }
  0x1e   :  { %382 = vperm.xlu0 %780, %v207_v10   ;;  %238 = vmatpush.msra.mxu2 %v209_v8  ;;  %v724_v24 = vsel %vm104_vm1, 1.0, %v941_v23  ;;  %v732_v25 = vsel %vm155_vm2, 1.0, %v941_v23  ;;  %v723_v35 = vsel %vm103_vm3, 1.0, %v941_v23 }
  0x1f   :  { %401 = vrot.lane.b32.xlu1 %v1034_v11, %s940_s17  ;;  %737 = vmatmul.msk.f32.vlgmr.msra.gmra.mxu2 %vm216_vm0, %v203_v12  ;;  %v163_v27 = vadd.f32 %v732_v25, %v724_v24  ;;  %v531_v24 = vld [vmem:[%s1224_s7 + $0x20] sm:$0xff]  ;;  %v530_v25 = vld [vmem:[%s1224_s7 + $0x18] sm:$0xff] }
  0x20   :  { %561 = vmatpush.msra.mxu0 %v534_v17 }
  0x22   :  { %562 = vmatpush.msra.mxu0 %v533_v18 }
  0x27   :  { %738 = vmatmul.msk.f32.gmra.mxu2 %vm216_vm0, %v204_v13 }
  0x71   :  { %v400_v32 = vpop.permute.xlu2 %399 }
  0x88   :  { %v388_v19 = vpop.permute.xlu0 %387 }
  0x89   :  { %v1051_v21 = vpop.permute.xlu1 %392  ;;  %v391_v22 = vmul.f32 %v1049_v20, %v388_v19 }
  0x8b   :  { %v396_v28 = vadd.f32 %v1051_v21, %v391_v22  ;;  %v1115_v22 = vld [vmem:[%s1224_s7 + $0x28] sm:$0xff] }
  0x8c   :  { %563 = vmatpush.msra.mxu0 %v1115_v22 }
  0x8e   :  { %564 = vmatpush.msra.mxu0 %v531_v24 }
  0x90   :  { %v383_v26 = vpop.permute.xlu0 %382  ;;  %565 = vmatpush.msra.mxu0 %v530_v25 }
  0x91   :  { %v390_v29 = vmul.f32 %v1049_v20, %v383_v26  ;;  %v402_v30 = vpop.permute.xlu1 %401  ;;  %v529_v26 = vld [vmem:[%s1224_s7 + $0x10] sm:$0xff] }
  0x92   :  { %v406_v31 = vadd.f32 %v402_v30, %v396_v28  ;;  %566 = vmatpush.msra.mxu0 %v529_v26 }
  0x93   :  { %v395_v33 = vadd.f32 %v1051_v21, %v390_v29 }
  0x94   :  { %v408_v34 = vmul.f32 %v406_v31, %v163_v27 }
  0x95   :  { %v405_v36 = vadd.f32 %v400_v32, %v395_v33  ;;  %v527_v32 = vld [vmem:[%s1224_s7] sm:$0xff] }
  0x96   :  { %413 = vrot.lane.b32.xlu2 %v408_v34, %s942_s8 }
  0x97   :  { %v407_v37 = vmul.f32 %v723_v35, %v405_v36 }
  0x99   :  { %411 = vrot.lane.b32.xlu0 %v407_v37, %s942_s8 }
  0x9e   :  { %438 = vperm.xlu2 %786, %v429_v38  }
  0xa1   :  { %441 = vperm.xlu0 %780, %v430_v39  }
  0xa2   :  { %v240_v42 = vpop.f32.mrf.mxu2 }
  0xa3   :  { %v241_v47 = vadd.f32 %v1049_v20, %v240_v42 }
  0xa5   :  { %v246_v50 = vmax.f32 %v241_v47, 0.0 }
  0xa6   :  { %447 = vperm.xlu2 %786, %v432_v40  }
  0xa7   :  { %v248_v52 = vadd.f32 %v246_v50, %v1023_v3 }
  0xa9   :  { %450 = vperm.xlu0 %780, %v433_v41   ;;  %v250_v57 = vmul.f32 %v723_v35, %v248_v52  ;;  %v808_v41 = vpack.i.bf16 %v533_v18, %v534_v17 }
  0xaa   :  { %v243_v45 = vpop.f32.mrf.mxu2 }
  0xab   :  { %v244_v46 = vadd.f32 %v1049_v20, %v243_v45 }
  0xad   :  { %v247_v48 = vmax.f32 %v244_v46, 0.0  ;;  %v818_v46 = vpack.i.bf16 %v529_v26, %v530_v25 }
  0xae   :  { %789 = vrot.lane.b32.xlu2 %v1029_v6, %s940_s17 }
  0xaf   :  { %v249_v51 = vadd.f32 %v247_v48, %v1034_v11 }
  0xb1   :  { %794 = vrot.lane.b32.xlu0 %v793_v9, %s940_s17  ;;  %v251_v53 = vmul.f32 %v249_v51, %v163_v27  ;;  %v528_v27 = vld [vmem:[%s1224_s7 + $0x8] sm:$0xff]  ;;  %s943_s7 = smov 64  }
  0xb2   :  { %567 = vmatpush.msra.mxu0 %v528_v27 }
  0xb4   :  { %568 = vmatpush.msra.mxu0 %v527_v32 }
  0xb6   :  { %804 = vrot.lane.b32.xlu2 %v793_v9, %s942_s8 }
  0xbe   :  { %809 = vrot.lane.b32.xlu2 %v808_v41, %s943_s7 }
  0xc6   :  { %819 = vrot.lane.b32.xlu2 %v818_v46, %s943_s7  ;;  %v95_v46 = vadd.s32 16, %v1041_v15 }
  0xf0   :  { %v414_v43 = vpop.permute.xlu2 %413 }
  0xf1   :  { %v418_v59 = vadd.f32 %v414_v43, %v251_v53 }
  0xf8   :  { %v439_v44 = vpop.permute.xlu2 %438 }
  0xf9   :  { %vm455_vm4 = vcmp.eq.s32.totalorder %v436_v7, %v439_v44 }
  0xfa   :  { %v743_v12 = vsel %vm455_vm4, 1.0, %v941_v23  ;;  %vm377_vm4 = vcmask 15360  }
 0x100   :  { %v1083_v49 = vpop.permute.xlu2 %447 }
 0x101   :  { %vm458_vm8 = vcmp.eq.s32.totalorder %v436_v7, %v1083_v49 }
 0x102   :  { %v746_v28 = vsel %vm458_vm8, 1.0, %v941_v23 }
 0x108   :  { %v790_v54 = vpop.permute.xlu2 %789 }
 0x109   :  { %v791_v55 = vunpack.i.l.bf16 %v790_v54  ;;  %v792_v56 = vunpack.i.h.bf16 %v790_v54  ;;  %v813_v54 = vpack.i.bf16 %v531_v24, %v1115_v22 }
 0x10b   :  { %v412_v58 = vpop.permute.xlu0 %411  ;;  %289 = vmatpush.msrb.mxu2 %v791_v55  ;;  %v823_v55 = vpack.i.bf16 %v527_v32, %v528_v27 }
 0x10c   :  { %v417_v60 = vadd.f32 %v412_v58, %v250_v57 }
 0x10d   :  { %290 = vmatpush.msrb.mxu2 %v792_v56  ;;  %824 = vrot.lane.b32.xlu2 %v823_v55, %s943_s7  ;;  %v97_v55 = vadd.s32 32, %v1041_v15 }
 0x10e   :  { %v781_v61 = vpack.i.bf16 %v417_v60, %v418_v59 }
 0x110   :  { %782 = vrot.lane.b32.xlu1 %v781_v61, %s942_s8  ;;  %v805_v48 = vpop.permute.xlu2 %804 }
 0x111   :  { %v806_v52 = vunpack.i.l.bf16 %v805_v48  ;;  %v807_v56 = vunpack.i.h.bf16 %v805_v48  ;;  %v96_v48 = vadd.s32 24, %v1041_v15 }
 0x113   :  { %v442_v62 = vpop.permute.xlu0 %441 }
 0x114   :  { %vm456_vm6 = vcmp.eq.s32.totalorder %v436_v7, %v442_v62 }
 0x115   :  { %644 = vrot.lane.b32.xlu2 %v1021_v2, %s942_s8 }
 0x118   :  { %444 = vperm.xlu1 %787, %v431_v63  }
 0x11b   :  { %v451_v0 = vpop.permute.xlu0 %450 }
 0x11c   :  { %vm459_vm9 = vcmp.eq.s32.totalorder %v436_v7, %v451_v0 }
 0x11d   :  { %v747_v29 = vsel %vm459_vm9, 1.0, %v941_v23 }
 0x120   :  { %453 = vperm.xlu1 %787, %v434_v1  }
 0x123   :  { %v795_v3 = vpop.permute.xlu0 %794 }
 0x124   :  { %v796_v4 = vunpack.i.l.bf16 %v795_v3  ;;  %v797_v5 = vunpack.i.h.bf16 %v795_v3 }
 0x126   :  { %291 = vmatpush.msrb.mxu2 %v796_v4 }
 0x128   :  { %292 = vmatpush.msrb.mxu2 %v797_v5  ;;  %799 = vrot.lane.b32.xlu1 %v1029_v6, %s942_s8  ;;  %v744_v6 = vsel %vm456_vm6, 1.0, %v941_v23  ;;  %s733_s8 = sld [smem:[#allocation4 + $0x1]] }
 0x129   :  { %739 = vmatmul.msk.f32.vlgmr.msrb.gmra.mxu2 %vm216_vm0, %v250_v57 }
 0x12e   :  { %s171_s27 = sadd.s32 24, %s733_s8 }
 0x131   :  { %740 = vmatmul.msk.f32.gmra.mxu2 %vm216_vm0, %v251_v53 }
 0x182   :  { %v783_v8 = vpop.permute.xlu1 %782 }
 0x183   :  { %v785_v9 = vunpack.i.h.bf16 %v783_v8  ;;  %v784_v10 = vunpack.i.l.bf16 %v783_v8 }
 0x185   :  { %v428_v11 = vsel %vm216_vm0, %v251_v53, %v784_v10  ;;  %v427_v13 = vsel %vm216_vm0, %v250_v57, %v785_v9 }
 0x186   :  { %506 = vmatpush.msra.mxu3 %v428_v11 }
 0x188   :  { %507 = vmatpush.msra.mxu3 %v427_v13 }
 0x189   :  { %749 = vmatmul.msk.f32.vlgmr.msra.gmra.mxu3 %vm473_vm5, %v743_v12 }
 0x18a   :  { %v445_v14 = vpop.permute.xlu1 %444 }
 0x18b   :  { %vm457_vm7 = vcmp.eq.s32.totalorder %v436_v7, %v445_v14 }
 0x18c   :  { %v745_v19 = vsel %vm457_vm7, 1.0, %v941_v23 }
 0x191   :  { %750 = vmatmul.msk.f32.gmra.mxu3 %vm473_vm5, %v744_v6 }
 0x192   :  { %v454_v30 = vpop.permute.xlu1 %453 }
 0x193   :  { %vm460_vm10 = vcmp.eq.s32.totalorder %v436_v7, %v454_v30 }
 0x194   :  { %v748_v31 = vsel %vm460_vm10, 1.0, %v941_v23 }
 0x199   :  { %751 = vmatmul.msk.f32.gmra.mxu3 %vm473_vm5, %v745_v19 }
 0x19a   :  { %v800_v47 = vpop.permute.xlu1 %799 }
 0x19b   :  { %v801_v49 = vunpack.i.l.bf16 %v800_v47  ;;  %v802_v50 = vunpack.i.h.bf16 %v800_v47 }
 0x19d   :  { %677 = vmatpush.msra.mxu1 %v801_v49  ;;  %v172_v49 = vstv %s171_s27 }
 0x19e   :  { %vm176_vm1 = vcmp.lt.s32.totalorder %v96_v48, %v172_v49  ;;  %vm177_vm3 = vcmp.lt.s32.totalorder %v97_v55, %v172_v49 }
 0x19f   :  { %678 = vmatpush.msra.mxu1 %v802_v50 }
 0x1a1   :  { %752 = vmatmul.msk.f32.gmra.mxu3 %vm473_vm5, %v746_v28  ;;  %679 = vmatpush.msra.mxu1 %v806_v52 }
 0x1a3   :  { %680 = vmatpush.msra.mxu1 %v807_v56 }
 0x1a9   :  { %753 = vmatmul.msk.f32.gmra.mxu3 %vm473_vm5, %v747_v29 }
 0x1ac   :  { %v294_v17 = vpop.f32.mrf.mxu2 }
 0x1b1   :  { %754 = vmatmul.msk.f32.gmra.mxu3 %vm473_vm5, %v748_v31 }
 0x1b4   :  { %v297_v30 = vpop.f32.mrf.mxu2 }
 0x20c   :  { %v509_v33 = vpop.f32.mrf.mxu3 }
 0x20d   :  { %755 = vmatmul.msk.f32.vlgmr.msra.gmra.mxu0 %vm347_vm11, %v509_v33 }
 0x214   :  { %v512_v34 = vpop.f32.mrf.mxu3 }
 0x215   :  { %756 = vmatmul.msk.f32.gmra.mxu0 %vm347_vm11, %v512_v34 }
 0x21c   :  { %v515_v35 = vpop.f32.mrf.mxu3 }
 0x21d   :  { %757 = vmatmul.msk.f32.gmra.mxu0 %vm347_vm11, %v515_v35 }
 0x224   :  { %v518_v36 = vpop.f32.mrf.mxu3 }
 0x225   :  { %758 = vmatmul.msk.f32.gmra.mxu0 %vm347_vm11, %v518_v36 }
 0x22c   :  { %v521_v37 = vpop.f32.mrf.mxu3 }
 0x22d   :  { %759 = vmatmul.msk.f32.gmra.mxu0 %vm347_vm11, %v521_v37 }
 0x234   :  { %v524_v38 = vpop.f32.mrf.mxu3 }
 0x235   :  { %760 = vmatmul.msk.f32.gmra.mxu0 %vm347_vm11, %v524_v38 }
 0x28a   :  { %v570_v39 = vpop.f32.mrf.mxu0 }
 0x28b   :  { %v571_v40 = vadd.f32 %v570_v39, %v1051_v21 }
 0x28d   :  { %v588_v42 = vmax.f32 %v571_v40, 0.0 }
 0x28f   :  { %600 = vrot.lane.b32.xlu0 %v588_v42, %s940_s17 }
 0x292   :  { %v573_v43 = vpop.f32.mrf.mxu0 }
 0x293   :  { %v574_v44 = vadd.f32 %v573_v43, %v1051_v21 }
 0x295   :  { %v589_v45 = vmax.f32 %v574_v44, 0.0 }
 0x297   :  { %602 = vrot.lane.b32.xlu1 %v589_v45, %s940_s17 }
 0x29a   :  { %v576_v51 = vpop.f32.mrf.mxu0 }
 0x29b   :  { %v577_v53 = vadd.f32 %v576_v51, %v1051_v21 }
 0x29d   :  { %v590_v57 = vmax.f32 %v577_v53, 0.0 }
 0x29f   :  { %814 = vrot.lane.b32.xlu1 %v813_v54, %s943_s7  ;;  %604 = vrot.lane.b32.xlu0 %v590_v57, %s940_s17  ;;  %v734_v54 = vsel %vm176_vm1, 1.0, %v941_v23 }
 0x2a2   :  { %v579_v58 = vpop.f32.mrf.mxu0 }
 0x2a3   :  { %v580_v59 = vadd.f32 %v579_v58, %v1051_v21 }
 0x2a5   :  { %v591_v60 = vmax.f32 %v580_v59, 0.0 }
 0x2a7   :  { %268 = vrot.lane.b32.xlu1 %v1049_v20, %s940_s17  ;;  %606 = vrot.lane.b32.xlu0 %v591_v60, %s940_s17  ;;  %v810_v20 = vpop.permute.xlu2 %809 }
 0x2a8   :  { %v812_v4 = vunpack.i.h.bf16 %v810_v20  ;;  %v811_v5 = vunpack.i.l.bf16 %v810_v20 }
 0x2aa   :  { %v582_v61 = vpop.f32.mrf.mxu0  ;;  %362 = vmatpush.msra.mxu2 %v811_v5 }
 0x2ab   :  { %v583_v62 = vadd.f32 %v582_v61, %v1051_v21  ;;  %v735_v61 = vsel %vm177_vm3, 1.0, %v941_v23 }
 0x2ac   :  { %363 = vmatpush.msra.mxu2 %v812_v4 }
 0x2ad   :  { %v592_v63 = vmax.f32 %v583_v62, 0.0  ;;  %v98_v62 = vadd.s32 40, %v1041_v15 }
 0x2af   :  { %608 = vrot.lane.b32.xlu0 %v592_v63, %s940_s17  ;;  %v820_v11 = vpop.permute.xlu2 %819  ;;  %vm178_vm6 = vcmp.lt.s32.totalorder %v98_v62, %v172_v49 }
 0x2b0   :  { %v821_v18 = vunpack.i.l.bf16 %v820_v11  ;;  %v822_v19 = vunpack.i.h.bf16 %v820_v11 }
 0x2b2   :  { %v585_v0 = vpop.f32.mrf.mxu0 }
 0x2b3   :  { %v586_v1 = vadd.f32 %v585_v0, %v1051_v21 }
 0x2b5   :  { %v593_v3 = vmax.f32 %v586_v1, 0.0 }
 0x2b7   :  { %610 = vrot.lane.b32.xlu1 %v593_v3, %s940_s17  ;;  %344 = vrot.lane.b32.xlu0 %v1021_v2, %s944_s1  ;;  %v825_v2 = vpop.permute.xlu2 %824  ;;  %s117_s17 = sld [smem:[#allocation4]] }
 0x2b8   :  { %v826_v22 = vunpack.i.l.bf16 %v825_v2  ;;  %v827_v26 = vunpack.i.h.bf16 %v825_v2 }
 0x2bd   :  { %v118_v37 = vstv %s117_s17 }
 0x2be   :  { %vm119_vm12 = vcmp.lt.s32.totalorder %v1041_v15, %v118_v37  ;;  %vm120_vm14 = vcmp.lt.s32.totalorder %v1044_v16, %v118_v37  ;;  %vm121_vm15 = vcmp.lt.s32.totalorder %v95_v46, %v118_v37  ;;  %vm123_vm2 = vcmp.lt.s32.totalorder %v97_v55, %v118_v37 }
 0x2bf   :  { %v645_v38 = vpop.permute.xlu2 %644  ;;  %v725_v39 = vsel %vm119_vm12, 1.0, %v941_v23  ;;  %v726_v43 = vsel %vm120_vm14, 1.0, %v941_v23  ;;  %v727_v50 = vsel %vm121_vm15, 1.0, %v941_v23  ;;  %vm124_vm5 = vcmp.lt.s32.totalorder %v98_v62, %v118_v37 }
 0x301   :  { %v601_v7 = vpop.permute.xlu0 %600 }
 0x302   :  { %v618_v8 = vadd.f32 %v601_v7, %v588_v42  ;;  %v730_v7 = vsel %vm124_vm5, 1.0, %v941_v23 }
 0x304   :  { %761 = vmatmul.msk.f32.vlgmr.msra.gmra.mxu1 %vm216_vm0, %v618_v8  ;;  %v736_v8 = vsel %vm178_vm6, 1.0, %v941_v23 }
 0x305   :  { %v202_v15 = vadd.f32 %v736_v8, %v730_v7 }
 0x309   :  { %v603_v9 = vpop.permute.xlu1 %602 }
 0x30a   :  { %v619_v10 = vadd.f32 %v603_v9, %v589_v45 }
 0x30c   :  { %762 = vmatmul.msk.f32.gmra.mxu1 %vm216_vm0, %v619_v10 }
 0x311   :  { %v815_v21 = vpop.permute.xlu1 %814  ;;  %v605_v12 = vpop.permute.xlu0 %604 }
 0x312   :  { %v817_v13 = vunpack.i.h.bf16 %v815_v21  ;;  %v816_v6 = vunpack.i.l.bf16 %v815_v21  ;;  %v620_v14 = vadd.f32 %v605_v12, %v590_v57 }
 0x314   :  { %364 = vmatpush.msra.mxu2 %v816_v6  ;;  %763 = vmatmul.msk.f32.gmra.mxu1 %vm216_vm0, %v620_v14 }
 0x316   :  { %365 = vmatpush.msra.mxu2 %v817_v13 }
 0x318   :  { %366 = vmatpush.msra.mxu2 %v821_v18 }
 0x319   :  { %v269_v24 = vpop.permute.xlu1 %268  ;;  %v607_v25 = vpop.permute.xlu0 %606 }
 0x31a   :  { %v295_v27 = vadd.f32 %v294_v17, %v269_v24  ;;  %v621_v28 = vadd.f32 %v607_v25, %v591_v60  ;;  %367 = vmatpush.msra.mxu2 %v822_v19  ;;  %v298_v31 = vadd.f32 %v297_v30, %v269_v24  ;;  %v729_v60 = vsel %vm123_vm2, 1.0, %v941_v23 }
 0x31c   :  { %v300_v29 = vmax.f32 %v295_v27, 0.0  ;;  %368 = vmatpush.msra.mxu2 %v826_v22  ;;  %764 = vmatmul.msk.f32.gmra.mxu1 %vm216_vm0, %v621_v28  ;;  %v301_v34 = vmax.f32 %v298_v31, 0.0 }
 0x31e   :  { %369 = vmatpush.msra.mxu2 %v827_v26 }
 0x31f   :  { %741 = vmatmul.msk.f32.vlgmr.msra.gmra.mxu2 %vm347_vm11, %v300_v29 }
 0x321   :  { %v609_v32 = vpop.permute.xlu0 %608 }
 0x322   :  { %v622_v33 = vadd.f32 %v609_v32, %v592_v63  ;;  %v201_v63 = vadd.f32 %v735_v61, %v729_v60 }
 0x324   :  { %765 = vmatmul.msk.f32.gmra.mxu1 %vm216_vm0, %v622_v33 }
 0x327   :  { %742 = vmatmul.msk.f32.gmra.mxu2 %vm347_vm11, %v301_v34 }
 0x329   :  { %v611_v35 = vpop.permute.xlu1 %610  ;;  %v345_v0 = vpop.permute.xlu0 %344 }
 0x32a   :  { %v623_v36 = vadd.f32 %v611_v35, %v593_v3 }
 0x32c   :  { %766 = vmatmul.msk.f32.gmra.mxu1 %vm216_vm0, %v623_v36  ;;  %vm122_vm0 = vcmp.lt.s32.totalorder %v96_v48, %v118_v37 }
 0x32d   :  { %v728_v53 = vsel %vm122_vm0, 1.0, %v941_v23 }
 0x32e   :  { %v200_v56 = vadd.f32 %v734_v54, %v728_v53 }
 0x381   :  { %v682_v40 = vpop.f32.mrf.mxu1 }
 0x382   :  { %v683_v41 = vadd.f32 %v682_v40, %v645_v38 }
 0x384   :  { %v700_v42 = vmul.f32 %v725_v39, %v683_v41 }
 0x386   :  { %707 = vst.msk [vmem:[%s1226_s9] sm:$0xff] %vm706_vm13, %v700_v42 }
 0x389   :  { %v685_v44 = vpop.f32.mrf.mxu1 }
 0x38a   :  { %v686_v45 = vadd.f32 %v685_v44, %v645_v38 }
 0x38c   :  { %v701_v47 = vmul.f32 %v726_v43, %v686_v45 }
 0x38e   :  { %708 = vst.msk [vmem:[%s1226_s9 + $0x8] sm:$0xff] %vm706_vm13, %v701_v47 }
 0x391   :  { %v688_v16 = vpop.f32.mrf.mxu1 }
 0x392   :  { %v689_v51 = vadd.f32 %v688_v16, %v645_v38 }
 0x394   :  { %v702_v52 = vmul.f32 %v727_v50, %v689_v51 }
 0x396   :  { %709 = vst.msk [vmem:[%s1226_s9 + $0x10] sm:$0xff] %vm706_vm13, %v702_v52 }
 0x399   :  { %v691_v57 = vpop.f32.mrf.mxu1 }
 0x39a   :  { %v692_v58 = vadd.f32 %v691_v57, %v645_v38 }
 0x39c   :  { %v703_v59 = vmul.f32 %v692_v58, %v200_v56 }
 0x39e   :  { %710 = vst.msk [vmem:[%s1226_s9 + $0x18] sm:$0xff] %vm706_vm13, %v703_v59 }
 0x3a1   :  { %v694_v1 = vpop.f32.mrf.mxu1 }
 0x3a2   :  { %v695_v3 = vadd.f32 %v694_v1, %v645_v38  ;;  %v371_v20 = vpop.f32.mrf.mxu2 }
 0x3a3   :  { %v372_v4 = vadd.f32 %v371_v20, %v345_v0 }
 0x3a4   :  { %v704_v5 = vmul.f32 %v695_v3, %v201_v63 }
 0x3a5   :  { %378 = vst.msk [vmem:[%s1227_s10] sm:$0xff] %vm377_vm4, %v372_v4 }
 0x3a6   :  { %711 = vst.msk [vmem:[%s1226_s9 + $0x20] sm:$0xff] %vm706_vm13, %v704_v5 }
 0x3a9   :  { %v697_v9 = vpop.f32.mrf.mxu1 }
 0x3aa   :  { %v698_v10 = vadd.f32 %v697_v9, %v645_v38  ;;  %v374_v11 = vpop.f32.mrf.mxu2 }
 0x3ab   :  { %v375_v21 = vadd.f32 %v374_v11, %v345_v0 }
 0x3ac   :  { %v705_v12 = vmul.f32 %v698_v10, %v202_v15 }
 0x3ad   :  { %379 = vst.msk [vmem:[%s1227_s10 + $0x8] sm:$0xff] %vm377_vm4, %v375_v21 }
 0x3ae   :  { %712 = vst.msk [vmem:[%s1226_s9 + $0x28] sm:$0xff] %vm706_vm13, %v705_v12 }
 0x3af   :  { %721 = vsyncpa [#allocation6], 1 }
 0x3b0   :  { %722 = vsyncpa [#allocation8], 1 }

</bundles_post_ra>
